<compile_context>
chip_gen: v5e
topology: v5e:2x2
jax: 0.10.0
libtpu: 0.0.40
codegen_flags: <defaults>
</compile_context>

<pallas_src>
import jax
import jax.numpy as jnp
from jax.experimental import pallas as pl
from jax.experimental.pallas import tpu as pltpu

NUM_STATE = 2        # MountainCar-v0 observation dim
NUM_ACTION = 3       # MountainCar-v0 action dim
HIDDEN = 100

HIDDEN_PAD = 128     # lane-dense hidden width
ACTION_PAD = 8       # narrow, sublane-friendly output width (>= NUM_ACTION)
W1_ROWS_PAD = 8      # sublane-dense fc1 weight rows (only rows 0..1 are used)
MAX_TB = 1024        # max batch tile for large (training) batches


def _round_up(n, m):
    return ((n + m - 1) // m) * m


def _choose_tile(B):
    """Pick (tb, b_pad, grid) so that tb is sublane-aligned and, whenever the
    padded batch is >= 16, there are at least 2 tiles (v7x megacore)."""
    b_pad8 = _round_up(max(B, 1), 8)
    if b_pad8 <= 8:
        tb = 8
    elif b_pad8 <= 2 * MAX_TB:
        tb = _round_up((b_pad8 + 1) // 2, 8)   # ~half the batch -> >= 2 tiles
    else:
        tb = MAX_TB
    b_pad = _round_up(B, tb)
    return tb, b_pad, b_pad // tb


def _net_kernel(x_ref, w1_ref, b1_ref, w2_ref, b2_ref, o_ref):
    x = x_ref[...]                                   # (TB, NUM_STATE)

    # --- fc1 + ReLU, entirely on the VPU (K=2 is far too small for the MXU).
    #     h[b, j] = sum_k x[b, k] * w1[k, j] + b1[j]
    acc = x[:, 0:1] * w1_ref[0:1, :]                 # (TB,1)*(1,HP) -> (TB,HP)
    for k in range(1, NUM_STATE):                    # static unroll (NUM_STATE=2)
        acc = acc + x[:, k:k + 1] * w1_ref[k:k + 1, :]
    h = jnp.maximum(acc + b1_ref[...], 0.0)          # padded lanes stay exactly 0

    # --- fc2 on the MXU: (TB,128) x (128,8), f32 accumulation.
    o = jnp.dot(h, w2_ref[...], preferred_element_type=jnp.float32)
    o_ref[...] = (o + b2_ref[...]).astype(o_ref.dtype)   # narrow 8-lane store


def net_forward(x, w1p, b1p, w2p, b2p):
    """x: (B, NUM_STATE) f32 -> (B, NUM_ACTION) f32.

    w1p: (W1_ROWS_PAD, HIDDEN_PAD)  zero-padded, pre-transposed fc1 weight
    b1p: (1, HIDDEN_PAD)            zero-padded fc1 bias
    w2p: (HIDDEN_PAD, ACTION_PAD)   zero-padded, pre-transposed fc2 weight
    b2p: (1, ACTION_PAD)            zero-padded fc2 bias
    """
    B = x.shape[0]
    tb, b_pad, n_tiles = _choose_tile(B)
    if b_pad != B:
        x = jnp.pad(x, ((0, b_pad - B), (0, 0)))     # zero rows, sliced off below

    rep = lambda shape: pl.BlockSpec(shape, lambda i: (0, 0))   # weights: resident

    out = pl.pallas_call(
        _net_kernel,
        out_shape=jax.ShapeDtypeStruct((b_pad, ACTION_PAD), jnp.float32),
        grid_spec=pltpu.PrefetchScalarGridSpec(
            num_scalar_prefetch=0,
            grid=(n_tiles,),
            in_specs=[
                pl.BlockSpec((tb, NUM_STATE), lambda i: (i, 0)),
                rep(w1p.shape),
                rep(b1p.shape),
                rep(w2p.shape),
                rep(b2p.shape),
            ],
            out_specs=pl.BlockSpec((tb, ACTION_PAD), lambda i: (i, 0)),
        ),
        compiler_params=pltpu.CompilerParams(
            dimension_semantics=("parallel",),       # v7x: shard batch tiles over 2 TCs
        ),
    )(x, w1p, b1p, w2p, b2p)

    return out[:B, :NUM_ACTION]


def init_params(key):
    """Deterministic params in PyTorch nn.Linear convention (weight = (out, in))."""
    k1, k2, k3, k4 = jax.random.split(key, 4)
    lim1 = 1.0 / jnp.sqrt(jnp.float32(NUM_STATE))
    lim2 = 1.0 / jnp.sqrt(jnp.float32(HIDDEN))
    w1_t = jax.random.uniform(k1, (HIDDEN, NUM_STATE), jnp.float32, -lim1, lim1)
    b1 = jax.random.uniform(k2, (HIDDEN,), jnp.float32, -lim1, lim1)
    w2_t = jax.random.uniform(k3, (NUM_ACTION, HIDDEN), jnp.float32, -lim2, lim2)
    b2 = jax.random.uniform(k4, (NUM_ACTION,), jnp.float32, -lim2, lim2)
    return w1_t, b1, w2_t, b2


def pack_params(w1_t, b1, w2_t, b2):
    """Transpose to (in, out) and zero-pad to lane/sublane-dense kernel shapes."""
    w1p = jnp.zeros((W1_ROWS_PAD, HIDDEN_PAD), jnp.float32)
    w1p = w1p.at[:NUM_STATE, :HIDDEN].set(w1_t.T)
    b1p = jnp.zeros((1, HIDDEN_PAD), jnp.float32).at[0, :HIDDEN].set(b1)
    w2p = jnp.zeros((HIDDEN_PAD, ACTION_PAD), jnp.float32)
    w2p = w2p.at[:HIDDEN, :NUM_ACTION].set(w2_t.T)
    b2p = jnp.zeros((1, ACTION_PAD), jnp.float32).at[0, :NUM_ACTION].set(b2)
    return w1p, b1p, w2p, b2p


def reference_forward(x, w1_t, b1, w2_t, b2):
    h = jnp.maximum(x @ w1_t.T + b1, 0.0)
    return h @ w2_t.T + b2


if __name__ == "__main__":
    key = jax.random.PRNGKey(0)
    kx, kx2, kp = jax.random.split(key, 3)

    w1_t, b1, w2_t, b2 = init_params(kp)
    kparams = pack_params(w1_t, b1, w2_t, b2)

    # Small per-step batch (sublane-aligned, single tile).
    batch = 8
    x = jax.random.normal(kx, (batch, NUM_STATE), jnp.float32)
    out = jax.block_until_ready(net_forward(x, *kparams))
    ref = reference_forward(x, w1_t, b1, w2_t, b2)
    assert out.shape == (batch, NUM_ACTION)
    assert jnp.allclose(out, ref, atol=1e-5, rtol=1e-5)

    # Ragged batch: exercises batch padding, the 2-tile grid path, and the
    # output slice back to (B, 3).
    batch2 = 37
    x2 = jax.random.normal(kx2, (batch2, NUM_STATE), jnp.float32)
    out2 = jax.block_until_ready(net_forward(x2, *kparams))
    ref2 = reference_forward(x2, w1_t, b1, w2_t, b2)
    assert out2.shape == (batch2, NUM_ACTION)
    assert jnp.allclose(out2, ref2, atol=1e-5, rtol=1e-5)

    print("KERNEL_OK")
</pallas_src>

<mosaic_0001>
module attributes {stable_mosaic.version = 11 : i64} {
  func.func @_net_kernel(%arg0: i32, %arg1: memref<8x2xf32, #tpu.memory_space<vmem>>, %arg2: memref<8x128xf32, #tpu.memory_space<vmem>>, %arg3: memref<1x128xf32, #tpu.memory_space<vmem>>, %arg4: memref<128x8xf32, #tpu.memory_space<vmem>>, %arg5: memref<1x8xf32, #tpu.memory_space<vmem>>, %arg6: memref<8x8xf32, #tpu.memory_space<vmem>>) attributes {dimension_semantics = [#tpu.dimension_semantics<parallel>], iteration_bounds = array<i64: 1>, scalar_prefetch = 0 : i64, scratch_operands = 0 : i64, tpu.core_type = #tpu.core_type<tc>, window_params = [{transform_indices = @transform_0, window_bounds = array<i64: 8, 2>}, {pipeline_mode = #tpu.pipeline_mode<synchronous>, transform_indices = @transform_1, window_bounds = array<i64: 8, 128>}, {pipeline_mode = #tpu.pipeline_mode<synchronous>, transform_indices = @transform_2, window_bounds = array<i64: 1, 128>}, {pipeline_mode = #tpu.pipeline_mode<synchronous>, transform_indices = @transform_3, window_bounds = array<i64: 128, 8>}, {pipeline_mode = #tpu.pipeline_mode<synchronous>, transform_indices = @transform_4, window_bounds = array<i64: 1, 8>}, {transform_indices = @transform_5, window_bounds = array<i64: 8, 8>}]} {
    %c0 = arith.constant 0 : index
    %c0_0 = arith.constant 0 : index
    %0 = vector.load %arg1[%c0, %c0_0] : memref<8x2xf32, #tpu.memory_space<vmem>>, vector<8x2xf32>
    %1 = vector.extract_strided_slice %0 {offsets = [0, 0], sizes = [8, 1], strides = [1, 1]} : vector<8x2xf32> to vector<8x1xf32>
    %c0_1 = arith.constant 0 : index
    %c0_2 = arith.constant 0 : index
    %2 = vector.load %arg2[%c0_1, %c0_2] : memref<8x128xf32, #tpu.memory_space<vmem>>, vector<1x128xf32>
    %3 = vector.broadcast %1 : vector<8x1xf32> to vector<8x128xf32>
    %4 = vector.broadcast %2 : vector<1x128xf32> to vector<8x128xf32>
    %5 = arith.mulf %3, %4 : vector<8x128xf32>
    %6 = vector.extract_strided_slice %0 {offsets = [0, 1], sizes = [8, 1], strides = [1, 1]} : vector<8x2xf32> to vector<8x1xf32>
    %c1 = arith.constant 1 : index
    %c0_3 = arith.constant 0 : index
    %7 = vector.load %arg2[%c1, %c0_3] : memref<8x128xf32, #tpu.memory_space<vmem>>, vector<1x128xf32>
    %8 = vector.broadcast %6 : vector<8x1xf32> to vector<8x128xf32>
    %9 = vector.broadcast %7 : vector<1x128xf32> to vector<8x128xf32>
    %10 = arith.mulf %8, %9 : vector<8x128xf32>
    %11 = arith.addf %5, %10 : vector<8x128xf32>
    %c0_4 = arith.constant 0 : index
    %c0_5 = arith.constant 0 : index
    %12 = vector.load %arg3[%c0_4, %c0_5] : memref<1x128xf32, #tpu.memory_space<vmem>>, vector<1x128xf32>
    %13 = vector.broadcast %12 : vector<1x128xf32> to vector<8x128xf32>
    %14 = arith.addf %11, %13 : vector<8x128xf32>
    %cst = arith.constant 0.000000e+00 : f32
    %15 = vector.broadcast %cst : f32 to vector<8x128xf32>
    %16 = arith.maximumf %14, %15 : vector<8x128xf32>
    %c0_6 = arith.constant 0 : index
    %c0_7 = arith.constant 0 : index
    %17 = vector.load %arg4[%c0_6, %c0_7] : memref<128x8xf32, #tpu.memory_space<vmem>>, vector<128x8xf32>
    %cst_8 = arith.constant dense<0.000000e+00> : vector<8x8xf32>
    %18 = tpu.matmul %16, %17, %cst_8 {dimension_numbers = #tpu.dot_dimension_numbers<[1], [0], [0], [1], [0, 0, 1, 1], [], []>} : vector<8x128xf32>, vector<128x8xf32>, vector<8x8xf32> -> vector<8x8xf32>
    %c0_9 = arith.constant 0 : index
    %c0_10 = arith.constant 0 : index
    %19 = vector.load %arg5[%c0_9, %c0_10] : memref<1x8xf32, #tpu.memory_space<vmem>>, vector<1x8xf32>
    %20 = vector.broadcast %19 : vector<1x8xf32> to vector<8x8xf32>
    %21 = arith.addf %18, %20 : vector<8x8xf32>
    %c0_11 = arith.constant 0 : index
    %c0_12 = arith.constant 0 : index
    %22 = vector.load %arg6[%c0_11, %c0_12] : memref<8x8xf32, #tpu.memory_space<vmem>>, vector<8x8xf32>
    tpu.vector_store %arg6[%c0_11, %c0_12], %21 {strides = array<i32>} : memref<8x8xf32, #tpu.memory_space<vmem>>, vector<8x8xf32>,
    return
  }
  func.func @transform_0(%arg0: i32) -> (i32, i32) {
    %c0_i32 = arith.constant 0 : i32
    %c0_i32_0 = arith.constant 0 : i32
    return %arg0, %c0_i32 : i32, i32
  }
  func.func @transform_1(%arg0: i32) -> (i32, i32) {
    %c0_i32 = arith.constant 0 : i32
    %c0_i32_0 = arith.constant 0 : i32
    %c0_i32_1 = arith.constant 0 : i32
    return %c0_i32, %c0_i32_0 : i32, i32
  }
  func.func @transform_2(%arg0: i32) -> (i32, i32) {
    %c0_i32 = arith.constant 0 : i32
    %c0_i32_0 = arith.constant 0 : i32
    %c0_i32_1 = arith.constant 0 : i32
    return %c0_i32, %c0_i32_0 : i32, i32
  }
  func.func @transform_3(%arg0: i32) -> (i32, i32) {
    %c0_i32 = arith.constant 0 : i32
    %c0_i32_0 = arith.constant 0 : i32
    %c0_i32_1 = arith.constant 0 : i32
    return %c0_i32, %c0_i32_0 : i32, i32
  }
  func.func @transform_4(%arg0: i32) -> (i32, i32) {
    %c0_i32 = arith.constant 0 : i32
    %c0_i32_0 = arith.constant 0 : i32
    %c0_i32_1 = arith.constant 0 : i32
    return %c0_i32, %c0_i32_0 : i32, i32
  }
  func.func @transform_5(%arg0: i32) -> (i32, i32) {
    %c0_i32 = arith.constant 0 : i32
    %c0_i32_0 = arith.constant 0 : i32
    return %arg0, %c0_i32 : i32, i32
  }
}

</mosaic_0001>

<bundles_post_ra>
// kernel: tpu_custom_call.1
= control target key start
LH: loop header
LB: loop body
LE: loop exit
PB: predicated region body
PF: predicated region fallthrough
CT: control target
= control target key end

     0   :  { %v137_v3 = vmov 0   ;;  %s236_s0 = inlined_call_operand.vmem [shape: f32[8,2], index: 0, kind: input, shape index: {}]   ;;  %s237_s1 = inlined_call_operand.vmem [shape: f32[8,128], index: 1, kind: input, shape index: {}]   ;;  %s238_s2 = inlined_call_operand.vmem [shape: f32[1,128], index: 2, kind: input, shape index: {}]   ;;  %s239_s3 = inlined_call_operand.vmem [shape: f32[128,8], index: 3, kind: input, shape index: {}]   ;;  %s240_s4 = inlined_call_operand.vmem [shape: f32[1,8], index: 4, kind: input, shape index: {}]   ;;  %s241_s5 = inlined_call_operand.hbm [shape: f32[8,8], index: 5, kind: output, shape index: {}]  }
   0x1   :  { %v21_v0 = vld [vmem:[%s236_s0] sm:$0xff]  ;;  %v59_v1 = vld [vmem:[%s239_s3 + $0x78] sm:$0xff]  ;;  %v58_v2 = vld [vmem:[%s239_s3 + $0x70] sm:$0xff]  ;;  %105 = vset.pattern.permute.xlu0 %v137_v3 }
   0x2   :  { %64 = vmatpush.msra.mxu0 %v59_v1  ;;  %25 = vperm.xlu0 %105, %v21_v0   ;;  %v57_v4 = vld [vmem:[%s239_s3 + $0x68] sm:$0xff]  ;;  %v56_v5 = vld [vmem:[%s239_s3 + $0x60] sm:$0xff] }
   0x4   :  { %65 = vmatpush.msra.mxu0 %v58_v2 }
   0x5   :  { %10 = vsyncpa [#allocation3], 0  ;;  %v55_v6 = vld [vmem:[%s239_s3 + $0x58] sm:$0xff]  ;;  %v54_v7 = vld [vmem:[%s239_s3 + $0x50] sm:$0xff]  ;;  %v138_v8 = vmov 1   ;;  %s139_s7 = smov [#allocation2]  }
   0x6   :  { %66 = vmatpush.msra.mxu0 %v57_v4  ;;  %v53_v9 = vld [vmem:[%s239_s3 + $0x48] sm:$0xff]  ;;  %v52_v10 = vld [vmem:[%s239_s3 + $0x40] sm:$0xff]  ;;  %v51_v11 = vld [vmem:[%s239_s3 + $0x38] sm:$0xff]  ;;  %s91_s8 = sshll.u32 %s139_s7, 4  ;;  %vm84_vm0 = vcmask 64512   ;;  %s92_s8 = int_to_ptr.vmem [resolvable:$true] %s91_s8 }
   0x7   :  { %v50_v12 = vld [vmem:[%s239_s3 + $0x30] sm:$0xff]  ;;  %v49_v13 = vld [vmem:[%s239_s3 + $0x28] sm:$0xff]  ;;  %v48_v14 = vld [vmem:[%s239_s3 + $0x20] sm:$0xff] }
   0x8   :  { %67 = vmatpush.msra.mxu0 %v56_v5  ;;  %v47_v15 = vld [vmem:[%s239_s3 + $0x18] sm:$0xff]  ;;  %v46_v16 = vld [vmem:[%s239_s3 + $0x10] sm:$0xff]  ;;  %v45_v17 = vld [vmem:[%s239_s3 + $0x8] sm:$0xff] }
   0x9   :  { %v44_v18 = vld [vmem:[%s239_s3] sm:$0xff] }
   0xa   :  { %68 = vmatpush.msra.mxu0 %v55_v6  ;;  %106 = vset.pattern.permute.xlu0 %v138_v8  ;;  %v107_v20 = vld [vmem:[%s237_s1] ss:$0 sm:$0xff]  ;;  %v108_v21 = vld [vmem:[%s237_s1 + $0x1] ss:$0 sm:$0xff]  ;;  %s93_s1 = sshll.u32 %s241_s5, 4  ;;  %s94_s1 = int_to_ptr.hbm [resolvable:$true] %s93_s1 }
   0xb   :  { %32 = vperm.xlu0 %106, %v21_v0   ;;  %v109_v25 = vld [vmem:[%s238_s2] ss:$0 sm:$0xff] }
   0xc   :  { %69 = vmatpush.msra.mxu0 %v54_v7  ;;  %v110_v29 = vld [vmem:[%s240_s4] ss:$0 sm:$0xff] }
   0xe   :  { %70 = vmatpush.msra.mxu0 %v53_v9 }
  0x10   :  { %71 = vmatpush.msra.mxu0 %v52_v10 }
  0x12   :  { %72 = vmatpush.msra.mxu0 %v51_v11 }
  0x14   :  { %73 = vmatpush.msra.mxu0 %v50_v12 }
  0x16   :  { %74 = vmatpush.msra.mxu0 %v49_v13 }
  0x18   :  { %75 = vmatpush.msra.mxu0 %v48_v14 }
  0x1a   :  { %76 = vmatpush.msra.mxu0 %v47_v15 }
  0x1c   :  { %77 = vmatpush.msra.mxu0 %v46_v16 }
  0x1e   :  { %78 = vmatpush.msra.mxu0 %v45_v17 }
  0x20   :  { %79 = vmatpush.msra.mxu0 %v44_v18 }
  0x74   :  { %v26_v19 = vpop.permute.xlu0 %25 }
  0x75   :  { %v29_v23 = vmul.f32 %v107_v20, %v26_v19 }
  0x7d   :  { %v33_v22 = vpop.permute.xlu0 %32 }
  0x7e   :  { %v36_v24 = vmul.f32 %v108_v21, %v33_v22 }
  0x80   :  { %v37_v26 = vadd.f32 %v36_v24, %v29_v23 }
  0x82   :  { %v42_v27 = vadd.f32 %v109_v25, %v37_v26 }
  0x84   :  { %v43_v28 = vmax.f32 %v42_v27, 0.0 }
  0x86   :  { %80 = vmatmul.f32.vlgmr.msra.gmra.mxu0 %v43_v28 }
 0x103   :  { %v81_v30 = vpop.f32.mrf.mxu0 }
 0x104   :  { %v82_v31 = vadd.f32 %v110_v29, %v81_v30 }
 0x106   :  { %85 = vst.msk [vmem:[#allocation2] sm:$0xff] %vm84_vm0, %v82_v31 }
 0x107   :  { %96 = dma.vmem_to_hbm [thread:$0]  %s92_s8, 128, %s94_s1, [#allocation3]  }
 0x108   :  { %135 = dma.done.wait [#allocation3], 128  }
 0x109   :  { %136 = vsyncadd [#allocation3], 4294967168 }
 0x10a   :  { %101 = vsyncpa [#allocation3], 1 }

</bundles_post_ra>
